<compile_context>
chip_gen: v5e
topology: v5e:2x2
jax: 0.10.0
libtpu: 0.0.40
codegen_flags: <defaults>
</compile_context>

<pallas_src>
import numpy as np
import jax
import jax.numpy as jnp
from jax.experimental import pallas as pl
from jax.experimental.pallas import tpu as pltpu


# ------------------------- parameter fusion (one-time) ------------------------- #

def fuse_concat_params(w0, b0, w1, b1):
    """Fold [Conv2d(C,c0,1), Conv2d(C,c1,3)] + center-crop + channel-concat into one
    augmented weight matrix (Cout, kh*kw*C + 1), Cout = c0 + c1.

    Column order of the conv part is (i, j, c) with tap index i*KW + j, matching the
    im2col slab built in `concat_forward`.  The 1x1 weight goes into the center tap
    (KH//2, KW//2) -- exactly the pixel the module's center-crop keeps for that
    branch.  The last column is the bias (paired with a constant-1 slab row).
    """
    c0, C = int(w0.shape[0]), int(w0.shape[1])
    c1 = int(w1.shape[0])
    KH, KW = int(w1.shape[2]), int(w1.shape[3])
    wc = jnp.zeros((c0 + c1, C, KH, KW), jnp.float32)
    wc = wc.at[:c0, :, KH // 2, KW // 2].set(w0[:, :, 0, 0])   # 1x1 -> center tap
    wc = wc.at[c0:].set(w1)                                     # 3x3 branch as-is
    w_mat = jnp.transpose(wc, (0, 2, 3, 1)).reshape(c0 + c1, KH * KW * C)
    bias = jnp.concatenate([b0, b1]).reshape(c0 + c1, 1)
    w_aug = jnp.concatenate([w_mat, bias], axis=1)              # (Cout, K)
    return w_aug.astype(jnp.bfloat16), (KH, KW)


# ------------------------------ fused forward ---------------------------------- #

def _gemm_kernel(x_ref, w_ref, o_ref):
    # x_ref: (K, B*HW) bf16, w_ref: (Cout, K) bf16, o_ref: (Cout, B*HW) f32.
    # Single MXU GEMM, f32 accumulate, one unmasked lane-dense store.
    o_ref[...] = jnp.dot(w_ref[...], x_ref[...],
                         preferred_element_type=jnp.float32)


def concat_forward(x, w_aug, kh=3, kw=3):
    """x: (B, C, H, W) NCHW f32 -> (B, Cout, H-kh+1, W-kw+1) f32 via one GEMM kernel."""
    B, C, H, W = (int(s) for s in x.shape)
    Cout = int(w_aug.shape[0])
    HW = H * W
    Ho, Wo = H - (kh - 1), W - (kw - 1)
    N = B * HW                          # batch folded into the lane dimension
    K = kh * kw * C + 1                 # +1 = bias row

    # ---- wrapper-side im2col (tiny XLA glue, done once per call) ---- #
    pad = (kh - 1) * W + (kw - 1)       # max flat tap shift -> OOB-free static slices
    x_flat = jnp.pad(x.reshape(B, C, HW), ((0, 0), (0, 0), (0, pad)))
    taps = [x_flat[:, :, i * W + j: i * W + j + HW]
            for i in range(kh) for j in range(kw)]           # each (B, C, HW)
    slab = jnp.stack(taps, axis=1).reshape(B, kh * kw * C, HW)   # (B, T*C, HW)
    slab = jnp.transpose(slab, (1, 0, 2)).reshape(kh * kw * C, N)
    slab = jnp.concatenate([slab, jnp.ones((1, N), slab.dtype)], axis=0)  # bias row
    slab = slab.astype(jnp.bfloat16)                         # (K, N)

    out = pl.pallas_call(
        _gemm_kernel,
        out_shape=jax.ShapeDtypeStruct((Cout, N), jnp.float32),
        grid=(1,),
        in_specs=[
            pl.BlockSpec((K, N), lambda i: (0, 0)),
            pl.BlockSpec((Cout, K), lambda i: (0, 0)),
        ],
        out_specs=pl.BlockSpec((Cout, N), lambda i: (0, 0)),
        compiler_params=pltpu.CompilerParams(
            dimension_semantics=("arbitrary",)),
        cost_estimate=pl.CostEstimate(
            flops=2 * Cout * K * N,
            bytes_accessed=K * N * 2 + Cout * K * 2 + Cout * N * 4,
            transcendentals=0),
    )(slab, w_aug)

    # NOTE: positions with h >= Ho or w >= Wo in this (Cout, B, H, W) view contain
    # row-wrap / zero-pad garbage; they are discarded by the crop below and must
    # never be consumed directly.  The crop == the module's center-crop result.
    out = out.reshape(Cout, B, H, W)
    return jnp.transpose(out, (1, 0, 2, 3))[:, :, :Ho, :Wo]


# ----------------------------------- main --------------------------------------- #

if __name__ == "__main__":
    key = jax.random.PRNGKey(0)
    k1, k2, k3, k4, k5 = jax.random.split(key, 5)

    B, C, H, W = 2, 4, 16, 16
    x = jax.random.normal(k1, (B, C, H, W), jnp.float32)

    # Deterministic synthetic parameters for the two sub-modules (PyTorch OIHW).
    w0 = 0.1 * jax.random.normal(k2, (3, C, 1, 1), jnp.float32)   # Conv2d(4,3,1)
    b0 = 0.1 * jax.random.normal(k3, (3,), jnp.float32)
    w1 = 0.1 * jax.random.normal(k4, (5, C, 3, 3), jnp.float32)   # Conv2d(4,5,3)
    b1 = 0.1 * jax.random.normal(k5, (5,), jnp.float32)

    # One-time weight+bias fusion (outside the per-call path).
    w_aug, (kh, kw) = fuse_concat_params(w0, b0, w1, b1)

    fwd = jax.jit(concat_forward)
    out = jax.block_until_ready(fwd(x, w_aug))
    assert out.shape == (B, 8, 14, 14), out.shape

    # Pure-JAX f32 reference with the original module's semantics.
    def conv_ref(xx, ww, bb):
        y = jax.lax.conv_general_dilated(
            xx, ww, (1, 1), "VALID",
            dimension_numbers=("NCHW", "OIHW", "NCHW"))
        return y + bb[None, :, None, None]

    r0 = conv_ref(x, w0, b0)                          # (B,3,16,16)
    r1 = conv_ref(x, w1, b1)                          # (B,5,14,14)
    d2 = (r0.shape[2] - r1.shape[2]) // 2
    d3 = (r0.shape[3] - r1.shape[3]) // 2
    r0c = r0[:, :, d2:d2 + r1.shape[2], d3:d3 + r1.shape[3]]
    ref = jnp.concatenate([r0c, r1], axis=1)

    # bf16 MXU operands (f32 accumulate) -> relaxed tolerance vs. the f32 reference.
    np.testing.assert_allclose(np.asarray(out), np.asarray(ref), rtol=2e-2, atol=2e-2)
    print("KERNEL_OK")
</pallas_src>

<mosaic_0001>
module attributes {stable_mosaic.version = 11 : i64} {
  func.func @_gemm_kernel(%arg0: i32, %arg1: memref<37x512xbf16, #tpu.memory_space<vmem>>, %arg2: memref<8x37xbf16, #tpu.memory_space<vmem>>, %arg3: memref<8x512xf32, #tpu.memory_space<vmem>>) attributes {dimension_semantics = [#tpu.dimension_semantics<arbitrary>], iteration_bounds = array<i64: 1>, scalar_prefetch = 0 : i64, scratch_operands = 0 : i64, tpu.core_type = #tpu.core_type<tc>, window_params = [{pipeline_mode = #tpu.pipeline_mode<synchronous>, transform_indices = @transform_0, window_bounds = array<i64: 37, 512>}, {pipeline_mode = #tpu.pipeline_mode<synchronous>, transform_indices = @transform_1, window_bounds = array<i64: 8, 37>}, {pipeline_mode = #tpu.pipeline_mode<synchronous>, transform_indices = @transform_2, window_bounds = array<i64: 8, 512>}]} {
    %c0 = arith.constant 0 : index
    %c0_0 = arith.constant 0 : index
    %0 = vector.load %arg2[%c0, %c0_0] : memref<8x37xbf16, #tpu.memory_space<vmem>>, vector<8x37xbf16>
    %c0_1 = arith.constant 0 : index
    %c0_2 = arith.constant 0 : index
    %1 = vector.load %arg1[%c0_1, %c0_2] : memref<37x512xbf16, #tpu.memory_space<vmem>>, vector<37x512xbf16>
    %cst = arith.constant dense<0.000000e+00> : vector<8x512xf32>
    %2 = tpu.matmul %0, %1, %cst {dimension_numbers = #tpu.dot_dimension_numbers<[1], [0], [0], [1], [0, 0, 1, 1], [], []>} : vector<8x37xbf16>, vector<37x512xbf16>, vector<8x512xf32> -> vector<8x512xf32>
    %c0_3 = arith.constant 0 : index
    %c0_4 = arith.constant 0 : index
    %3 = vector.load %arg3[%c0_3, %c0_4] : memref<8x512xf32, #tpu.memory_space<vmem>>, vector<8x512xf32>
    tpu.vector_store %arg3[%c0_3, %c0_4], %2 {strides = array<i32>} : memref<8x512xf32, #tpu.memory_space<vmem>>, vector<8x512xf32>,
    return
  }
  func.func @transform_0(%arg0: i32) -> (i32, i32) {
    %c0_i32 = arith.constant 0 : i32
    %c0_i32_0 = arith.constant 0 : i32
    %c0_i32_1 = arith.constant 0 : i32
    return %c0_i32, %c0_i32_0 : i32, i32
  }
  func.func @transform_1(%arg0: i32) -> (i32, i32) {
    %c0_i32 = arith.constant 0 : i32
    %c0_i32_0 = arith.constant 0 : i32
    %c0_i32_1 = arith.constant 0 : i32
    return %c0_i32, %c0_i32_0 : i32, i32
  }
  func.func @transform_2(%arg0: i32) -> (i32, i32) {
    %c0_i32 = arith.constant 0 : i32
    %c0_i32_0 = arith.constant 0 : i32
    %c0_i32_1 = arith.constant 0 : i32
    return %c0_i32, %c0_i32_0 : i32, i32
  }
}

</mosaic_0001>

<bundles_post_ra>
// kernel: concat_forward.1
= control target key start
LH: loop header
LB: loop body
LE: loop exit
PB: predicated region body
PF: predicated region fallthrough
CT: control target
= control target key end

     0   :  { %vm77_vm0 = vcmask 1041408   ;;  %vm78_vm1 = vcmask 1042432   ;;  %v198_v1 = vmov 65535   ;;  %vm73_vm2 = vcmask 302080   ;;  %s283_s0 = inlined_call_operand.vmem [shape: bf16[37,512], index: 0, kind: input, shape index: {}]   ;;  %s284_s1 = inlined_call_operand.vmem [shape: bf16[8,37], index: 1, kind: input, shape index: {}]   ;;  %s285_s2 = inlined_call_operand.vmem [shape: f32[8,512], index: 2, kind: output, shape index: {}]  }
   0x1   :  { %v21_v0 = vld [vmem:[%s283_s0 + $0x40] sm:$0x77]  ;;  %v79_v2 = vsel %vm77_vm0, 4294967295, %v198_v1  ;;  %v22_v3 = vld [vmem:[%s283_s0 + $0x48] sm:$0x77] }
   0x2   :  { %v49_v4 = vunpack.c.l.b16 %v21_v0  ;;  %v50_v5 = vunpack.c.h.b16 %v21_v0  ;;  %v51_v6 = vunpack.c.l.b16 %v22_v3  ;;  %v80_v7 = vsel %vm78_vm1, %v79_v2, 0  ;;  %v171_v12 = vld [vmem:[%s283_s0 + $0x20] sm:$0xf]  ;;  %v195_v13 = vld [vmem:[%s283_s0 + $0x2c] sm:$0xf0] }
   0x3   :  { %v52_v8 = vunpack.c.h.b16 %v22_v3  ;;  %v193_v15 = vld [vmem:[%s283_s0 + $0x24] sm:$0xf]  ;;  %v173_v16 = vld [vmem:[%s283_s0 + $0x30] sm:$0xf0]  ;;  %v179_v17 = vld [vmem:[%s283_s0 + $0x28] sm:$0xf]  ;;  %v172_v25 = vor.u32 %v195_v13, %v171_v12 }
   0x4   :  { %v61_v9 = vpack.c.b16 %v49_v4, %v49_v4  ;;  %v62_v10 = vpack.c.b16 %v50_v5, %v50_v5  ;;  %v63_v11 = vpack.c.b16 %v51_v6, %v51_v6  ;;  %v196_v21 = vld [vmem:[%s283_s0 + $0x34] sm:$0xf0]  ;;  %v194_v22 = vld [vmem:[%s283_s0 + $0x2c] sm:$0xf]  ;;  %v181_v23 = vld [vmem:[%s283_s0 + $0x38] sm:$0xf0]  ;;  %v176_v26 = vor.u32 %v193_v15, %v173_v16 }
   0x5   :  { %v64_v14 = vpack.c.b16 %v52_v8, %v52_v8  ;;  %v155_v27 = vld [vmem:[%s283_s0] sm:$0xf]  ;;  %v191_v28 = vld [vmem:[%s283_s0 + $0xc] sm:$0xf0]  ;;  %v180_v29 = vor.u32 %v196_v21, %v179_v17  ;;  %v184_v30 = vor.u32 %v194_v22, %v181_v23  ;;  %v189_v31 = vld [vmem:[%s283_s0 + $0x4] sm:$0xf] }
   0x6   :  { %v82_v18 = vand.u32 %v80_v7, %v61_v9  ;;  %v85_v19 = vand.u32 %v80_v7, %v62_v10  ;;  %v88_v20 = vand.u32 %v80_v7, %v63_v11  ;;  %v157_v32 = vld [vmem:[%s283_s0 + $0x10] sm:$0xf0]  ;;  %v163_v33 = vld [vmem:[%s283_s0 + $0x8] sm:$0xf]  ;;  %v192_v34 = vld [vmem:[%s283_s0 + $0x14] sm:$0xf0]  ;;  %v156_v37 = vor.u32 %v191_v28, %v155_v27 }
   0x7   :  { %v91_v24 = vand.u32 %v80_v7, %v64_v14  ;;  %v190_v35 = vld [vmem:[%s283_s0 + $0xc] sm:$0xf]  ;;  %v165_v36 = vld [vmem:[%s283_s0 + $0x18] sm:$0xf0]  ;;  %v160_v38 = vor.u32 %v189_v31, %v157_v32  ;;  %v164_v39 = vor.u32 %v192_v34, %v163_v33  ;;  %v12_v41 = vld [vmem:[%s284_s1] sm:$0xf] }
   0x8   :  { %98 = vmatpush.bf16.msra.mxu0 %v82_v18  ;;  %111 = vmatpush.bf16.msra.mxu1 %v85_v19  ;;  %v168_v40 = vor.u32 %v190_v35, %v165_v36 }
   0x9   :  { %124 = vmatpush.bf16.msra.mxu2 %v88_v20  ;;  %137 = vmatpush.bf16.msra.mxu3 %v91_v24 }
   0xc   :  { %99 = vmatpush.bf16.msra.mxu0 %v172_v25  ;;  %112 = vmatpush.bf16.msra.mxu1 %v176_v26 }
   0xd   :  { %125 = vmatpush.bf16.msra.mxu2 %v180_v29  ;;  %138 = vmatpush.bf16.msra.mxu3 %v184_v30 }
  0x10   :  { %100 = vmatpush.bf16.msra.mxu0 %v156_v37  ;;  %113 = vmatpush.bf16.msra.mxu1 %v160_v38 }
  0x11   :  { %126 = vmatpush.bf16.msra.mxu2 %v164_v39  ;;  %139 = vmatpush.bf16.msra.mxu3 %v168_v40 }
  0x13   :  { %185 = vmatmul.msk.bf16.vlgmr.msra.gmra.mxu0 %vm73_vm2, %v12_v41  ;;  %186 = vmatmul.msk.bf16.vlgmr.msra.gmra.mxu1 %vm73_vm2, %v12_v41 }
  0x14   :  { %187 = vmatmul.msk.bf16.vlgmr.msra.gmra.mxu2 %vm73_vm2, %v12_v41  ;;  %188 = vmatmul.msk.bf16.vlgmr.msra.gmra.mxu3 %vm73_vm2, %v12_v41 }
  0x90   :  { %v102_v42 = vpop.f32.mrf.mxu0  ;;  %v115_v43 = vpop.f32.mrf.mxu1 }
  0x91   :  { %145 = vst [vmem:[%s285_s2] sm:$0xff] %v102_v42 }
  0x92   :  { %146 = vst [vmem:[%s285_s2 + $0x8] sm:$0xff] %v115_v43 }
  0x97   :  { %v128_v44 = vpop.f32.mrf.mxu2  ;;  %v141_v45 = vpop.f32.mrf.mxu3 }
  0x98   :  { %147 = vst [vmem:[%s285_s2 + $0x10] sm:$0xff] %v128_v44  ;;  %v104_v46 = vpop.f32.mrf.mxu0  ;;  %v117_v47 = vpop.f32.mrf.mxu1 }
  0x99   :  { %148 = vst [vmem:[%s285_s2 + $0x18] sm:$0xff] %v141_v45 }
  0x9f   :  { %v130_v48 = vpop.f32.mrf.mxu2  ;;  %v143_v49 = vpop.f32.mrf.mxu3 }

</bundles_post_ra>
